<compile_context>
chip_gen: v5e
topology: v5e:2x2
jax: 0.10.0
libtpu: 0.0.40
codegen_flags: <defaults>
</compile_context>

<pallas_src>
import functools

import jax
import jax.numpy as jnp
from jax.experimental import pallas as pl
from jax.experimental.pallas import tpu as pltpu

LANES = 128
_APPROX_TOPK_MIN_SIZE = 1 << 20     # switch to approx_max_k above this many CE entries


def _dc_topk_kernel(logits_ref, tgt_ref, ce_ref, stats_ref, acc_ref, *, padded):
    # logits_ref: (1, C, S, 128)    tgt_ref  : (1, S, 128) i32
    # ce_ref    : (1, S, 128) f32   stats_ref: (1, 1, 3, C) f32 rows=(tp, sum_p, count)
    # acc_ref   : (3, C, 128) f32 lane-resident partial sums (single merged scratch)
    t = pl.program_id(2)

    @pl.when(t == 0)
    def _():
        acc_ref[...] = jnp.zeros_like(acc_ref)

    logits = logits_ref[0].astype(jnp.float32)            # (C, S, 128)
    tgt = tgt_ref[0]                                       # (S, 128) int32
    C = logits.shape[0]

    # boolean one-hot via a tiny (C,1,1) iota broadcast-compare (no big iota temp)
    class_ids = jax.lax.broadcasted_iota(jnp.int32, (C, 1, 1), 0)
    onehot = class_ids == tgt[None]                        # (C, S, 128) bool

    # softmax / log-sum-exp over the leading channel axis -> pure VPU elementwise
    # work over dense (S, 128) vregs (no XLU sublane reductions).
    m = jnp.max(logits, axis=0)                            # (S, 128)
    e = jnp.exp(logits - m[None])                          # (C, S, 128)
    s = jnp.sum(e, axis=0)                                 # (S, 128)
    inv_s = pl.reciprocal(s, approx=True)                  # EUP slot; dice tolerates it
    probs = e * inv_s[None]                                # (C, S, 128)
    lse = m + jnp.log(s)                                   # exact, used for CE

    # per-pixel CE:  -log p(target) = logsumexp(logits) - logit[target]
    logit_t = jnp.sum(jnp.where(onehot, logits, 0.0), axis=0)   # (S, 128)
    ce = lse - logit_t
    if padded:
        valid = tgt >= 0                                   # padded pixels carry -1
        ce = jnp.where(valid, ce, -jnp.inf)                # never picked by top-k
        p_term = jnp.where(valid[None], probs, 0.0)        # exclude pads from sum(p)
    else:
        p_term = probs
    ce_ref[0] = ce

    # dice-stat partials, lane-resident; fp/fn are derived in the JAX tail:
    #   fp = sum(p) - tp ,  fn = count - tp
    acc_ref[0] += jnp.sum(jnp.where(onehot, probs, 0.0), axis=1)   # tp      (C, 128)
    acc_ref[1] += jnp.sum(p_term, axis=1)                          # sum(p)  (C, 128)
    acc_ref[2] += jnp.sum(jnp.where(onehot, 1.0, 0.0), axis=1)     # count   (C, 128)

    @pl.when(t == pl.num_programs(2) - 1)
    def _():
        stats_ref[0, 0] = jnp.sum(acc_ref[...], axis=2)            # (3, C)


def _vmem_capacity_bytes():
    try:
        return int(pltpu.get_tpu_info().vmem_capacity_bytes)
    except Exception:
        return 64 * 1024 * 1024      # conservative fallback (v7x per-core VMEM)


def _plan_blocks(nb, c, in_itemsize, vmem_bytes):
    """Pick sublane rows S per grid step from the total live VMEM footprint.

    Returns (S, nb_padded, n_steps). S is a multiple of 8 (or the full padded
    dim), so the (8,128) BlockSpec rule always holds without divisor searches.
    """
    per_row = (6 * c * LANES * 4                 # f32 (C, S, 128) intermediates
               + 2 * c * LANES * in_itemsize     # double-buffered logits block
               + 2 * LANES * 4                   # double-buffered target block
               + 2 * LANES * 4                   # double-buffered CE block
               + 10 * LANES * 4)                 # (S, 128) temporaries
    budget = int(vmem_bytes * 0.55)
    cap = max(8, min(4096, budget // per_row))
    cap = (cap // 8) * 8
    n_steps = -(-nb // cap)
    if n_steps <= 1:
        return nb, nb, 1                         # block equals full dim -> always legal
    rows = -(-nb // n_steps)
    rows = -(-rows // 8) * 8                     # (8,128)-aligned
    return rows, rows * n_steps, n_steps


def dc_and_topk_loss(net_output, target, *, weight_ce=1.0, weight_dice=1.0,
                     topk_percent=10, smooth=1e-5, do_bg=False):
    """net_output: (B, C, *spatial) logits (f32 or bf16); target: (B, 1, *spatial) ints."""
    B, C = net_output.shape[:2]
    N = 1
    for d in net_output.shape[2:]:
        N *= d

    vmem_bytes = _vmem_capacity_bytes()
    nb = -(-N // LANES)
    S, nb_padded, n_steps_total = _plan_blocks(nb, C, net_output.dtype.itemsize, vmem_bytes)
    n_padded = nb_padded * LANES
    padded = n_padded != N

    # keep the input dtype (bf16 ingestion halves DMA bytes); upcast in-kernel
    # TODO(synk): pass target as int16 (and/or emit CE as bf16) to cut v5e HBM bytes.
    x = net_output.reshape(B, C, N)
    t = target.reshape(B, N).astype(jnp.int32)
    if padded:
        pad = n_padded - N
        x = jnp.pad(x, ((0, 0), (0, 0), (0, pad)))
        t = jnp.pad(t, ((0, 0), (0, pad)), constant_values=-1)   # -1 => invalid pixel
    logits = x.reshape(B, C, nb_padded, LANES)
    tgt = t.reshape(B, nb_padded, LANES)

    # Spatial shard axis keeps both v7x TensorCores busy when B == 1 (harmless on 1-TC chips).
    n_shards = 2 if (B == 1 and n_steps_total >= 2 and n_steps_total % 2 == 0) else 1
    n_steps = n_steps_total // n_shards
    grid = (B, n_shards, n_steps)

    kernel = functools.partial(_dc_topk_kernel, padded=padded)

    ce_map, stats = pl.pallas_call(
        kernel,
        grid_spec=pltpu.PrefetchScalarGridSpec(
            num_scalar_prefetch=0,
            grid=grid,
            in_specs=[
                pl.BlockSpec((1, C, S, LANES),
                             lambda b, sh, k: (b, 0, sh * n_steps + k, 0)),
                pl.BlockSpec((1, S, LANES),
                             lambda b, sh, k: (b, sh * n_steps + k, 0)),
            ],
            out_specs=[
                pl.BlockSpec((1, S, LANES),
                             lambda b, sh, k: (b, sh * n_steps + k, 0)),
                pl.BlockSpec((1, 1, 3, C),
                             lambda b, sh, k: (b, sh, 0, 0)),      # per (batch, shard) stats
            ],
            scratch_shapes=[
                pltpu.VMEM((3, C, LANES), jnp.float32),            # merged tp/sum_p/count
            ],
        ),
        out_shape=(
            jax.ShapeDtypeStruct((B, nb_padded, LANES), jnp.float32),
            jax.ShapeDtypeStruct((B, n_shards, 3, C), jnp.float32),
        ),
        compiler_params=pltpu.CompilerParams(
            dimension_semantics=("parallel", "parallel", "arbitrary"),
            vmem_limit_bytes=int(vmem_bytes * 0.85)),
    )(logits, tgt)

    # ---- SoftDiceLoss tail (tiny per-class scalars; batch_dice=True) ----
    tp = jnp.sum(stats[:, :, 0, :], axis=(0, 1))
    fp = jnp.sum(stats[:, :, 1, :], axis=(0, 1)) - tp      # sum(p) - tp
    fn = jnp.sum(stats[:, :, 2, :], axis=(0, 1)) - tp      # count  - tp
    dc = (2.0 * tp + smooth) / jnp.clip(2.0 * tp + fp + fn + smooth, 1e-8)
    if not do_bg:
        dc = dc[1:]
    dc_loss = -jnp.mean(dc)

    # ---- TopKLoss tail: keep the k% largest per-pixel CE values, mean ----
    res = ce_map.reshape(-1)
    k = max(1, int(B * N * topk_percent / 100))             # k from true pixel count
    if res.shape[0] >= _APPROX_TOPK_MIN_SIZE:
        # TPU-accelerated partial reduction; the exact global sort dominates wall
        # clock at production sizes.
        # TODO(synk): fuse a histogram/threshold pass into the kernel so the CE map
        # never round-trips HBM at all.
        topk_vals, _ = jax.lax.approx_max_k(res, k, recall_target=0.99)
    else:
        topk_vals, _ = jax.lax.top_k(res, k)
    ce_loss = jnp.mean(topk_vals)

    return weight_ce * ce_loss + weight_dice * dc_loss


def _reference_loss(net_output, target, *, weight_ce=1.0, weight_dice=1.0,
                    topk_percent=10, smooth=1e-5, do_bg=False):
    """Pure-JAX reference mirroring the PyTorch forward."""
    B, C = net_output.shape[:2]
    x = net_output.astype(jnp.float32)
    probs = jax.nn.softmax(x, axis=1)
    onehot = jax.nn.one_hot(target[:, 0], C, axis=1, dtype=jnp.float32)
    axes = (0,) + tuple(range(2, x.ndim))                   # batch_dice=True
    tp = jnp.sum(probs * onehot, axis=axes)
    fp = jnp.sum(probs * (1.0 - onehot), axis=axes)
    fn = jnp.sum((1.0 - probs) * onehot, axis=axes)
    dc = (2.0 * tp + smooth) / jnp.clip(2.0 * tp + fp + fn + smooth, 1e-8)
    if not do_bg:
        dc = dc[1:]
    dc_loss = -jnp.mean(dc)

    logp = jax.nn.log_softmax(x, axis=1)
    ce = -jnp.take_along_axis(logp, target, axis=1)[:, 0]    # (B, *spatial)
    k = max(1, int(ce.size * topk_percent / 100))
    ce_loss = jnp.mean(jax.lax.top_k(ce.reshape(-1), k)[0])
    return weight_ce * ce_loss + weight_dice * dc_loss


if __name__ == "__main__":
    key = jax.random.PRNGKey(0)
    k1, k2, k3, k4 = jax.random.split(key, 4)

    # Case 1: lane-aligned spatial size (no padding path).
    B, C, H, W = 2, 4, 16, 16
    net_output = jax.random.normal(k1, (B, C, H, W), dtype=jnp.float32)
    target = jax.random.randint(k2, (B, 1, H, W), 0, C, dtype=jnp.int32)
    loss = jax.block_until_ready(dc_and_topk_loss(net_output, target))
    ref = jax.block_until_ready(_reference_loss(net_output, target))
    # approx reciprocal in the dice probabilities gives a ~1e-4-level deviation
    assert jnp.abs(loss - ref) < 2e-3, (loss, ref)

    # Case 2: non-aligned spatial size (exercises padding + valid-mask path).
    H2, W2 = 10, 10
    net_output2 = jax.random.normal(k3, (B, C, H2, W2), dtype=jnp.float32)
    target2 = jax.random.randint(k4, (B, 1, H2, W2), 0, C, dtype=jnp.int32)
    loss2 = jax.block_until_ready(dc_and_topk_loss(net_output2, target2))
    ref2 = jax.block_until_ready(_reference_loss(net_output2, target2))
    assert jnp.abs(loss2 - ref2) < 2e-3, (loss2, ref2)

    print("KERNEL_OK")
</pallas_src>

<mosaic_0001>
module attributes {stable_mosaic.version = 11 : i64} {
  func.func @_dc_topk_kernel(%arg0: i32, %arg1: i32, %arg2: i32, %arg3: memref<1x4x2x128xf32, #tpu.memory_space<vmem>>, %arg4: memref<1x2x128xi32, #tpu.memory_space<vmem>>, %arg5: memref<1x2x128xf32, #tpu.memory_space<vmem>>, %arg6: memref<1x1x3x4xf32, #tpu.memory_space<vmem>>, %arg7: memref<3x4x128xf32, #tpu.memory_space<vmem>>) attributes {dimension_semantics = [#tpu.dimension_semantics<parallel>, #tpu.dimension_semantics<parallel>, #tpu.dimension_semantics<arbitrary>], iteration_bounds = array<i64: 2, 1, 1>, scalar_prefetch = 0 : i64, scratch_operands = 1 : i64, tpu.core_type = #tpu.core_type<tc>, window_params = [{transform_indices = @transform_0, window_bounds = array<i64: 1, 4, 2, 128>}, {transform_indices = @transform_1, window_bounds = array<i64: 1, 2, 128>}, {transform_indices = @transform_2, window_bounds = array<i64: 1, 2, 128>}, {transform_indices = @transform_3, window_bounds = array<i64: 1, 1, 3, 4>}]} {
    %c0_i32 = arith.constant 0 : i32
    %0 = arith.cmpi eq, %arg2, %c0_i32 : i32
    %1 = arith.extui %0 : i1 to i32
    %c0_i32_0 = arith.constant 0 : i32
    %2 = arith.cmpi ne, %1, %c0_i32_0 : i32
    scf.if %2 {
      %cst_37 = arith.constant 0.000000e+00 : f32
      %60 = vector.broadcast %cst_37 : f32 to vector<3x4x128xf32>
      %c0_38 = arith.constant 0 : index
      %c0_39 = arith.constant 0 : index
      %c0_40 = arith.constant 0 : index
      %61 = vector.load %arg7[%c0_38, %c0_39, %c0_40] : memref<3x4x128xf32, #tpu.memory_space<vmem>>, vector<3x4x128xf32>
      tpu.vector_store %arg7[%c0_38, %c0_39, %c0_40], %60 {strides = array<i32>} : memref<3x4x128xf32, #tpu.memory_space<vmem>>, vector<3x4x128xf32>,
    } else {
    }
    %c0 = arith.constant 0 : index
    %c0_1 = arith.constant 0 : index
    %c0_2 = arith.constant 0 : index
    %c0_3 = arith.constant 0 : index
    %3 = vector.load %arg3[%c0, %c0_1, %c0_2, %c0_3] : memref<1x4x2x128xf32, #tpu.memory_space<vmem>>, vector<1x4x2x128xf32>
    %4 = vector.shape_cast %3 : vector<1x4x2x128xf32> to vector<4x2x128xf32>
    %c0_4 = arith.constant 0 : index
    %c0_5 = arith.constant 0 : index
    %c0_6 = arith.constant 0 : index
    %5 = vector.load %arg4[%c0_4, %c0_5, %c0_6] : memref<1x2x128xi32, #tpu.memory_space<vmem>>, vector<1x2x128xi32>
    %6 = vector.shape_cast %5 : vector<1x2x128xi32> to vector<2x128xi32>
    %7 = tpu.iota {dimensions = array<i32: 0>} : vector<4x1x1xi32>
    %8 = vector.shape_cast %6 : vector<2x128xi32> to vector<1x2x128xi32>
    %9 = vector.broadcast %7 : vector<4x1x1xi32> to vector<4x2x128xi32>
    %10 = vector.broadcast %8 : vector<1x2x128xi32> to vector<4x2x128xi32>
    %11 = arith.cmpi eq, %9, %10 : vector<4x2x128xi32>
    %cst = arith.constant dense<0xFF800000> : vector<2x128xf32>
    %12 = vector.multi_reduction <maximumf>, %4, %cst [0] : vector<4x2x128xf32> to vector<2x128xf32>
    %13 = vector.shape_cast %12 : vector<2x128xf32> to vector<1x2x128xf32>
    %14 = vector.broadcast %13 : vector<1x2x128xf32> to vector<4x2x128xf32>
    %15 = arith.subf %4, %14 : vector<4x2x128xf32>
    %16 = math.exp %15 : vector<4x2x128xf32>
    %cst_7 = arith.constant dense<0.000000e+00> : vector<2x128xf32>
    %17 = vector.multi_reduction <add>, %16, %cst_7 [0] : vector<4x2x128xf32> to vector<2x128xf32>
    %18 = tpu.reciprocal %17 {approx = true} : vector<2x128xf32> -> vector<2x128xf32>
    %19 = vector.shape_cast %18 : vector<2x128xf32> to vector<1x2x128xf32>
    %20 = vector.broadcast %19 : vector<1x2x128xf32> to vector<4x2x128xf32>
    %21 = arith.mulf %16, %20 : vector<4x2x128xf32>
    %22 = math.log %17 : vector<2x128xf32>
    %23 = arith.addf %12, %22 : vector<2x128xf32>
    %cst_8 = arith.constant 0.000000e+00 : f32
    %24 = vector.broadcast %cst_8 : f32 to vector<4x2x128xf32>
    %25 = arith.select %11, %4, %24 : vector<4x2x128xi1>, vector<4x2x128xf32>
    %cst_9 = arith.constant dense<0.000000e+00> : vector<2x128xf32>
    %26 = vector.multi_reduction <add>, %25, %cst_9 [0] : vector<4x2x128xf32> to vector<2x128xf32>
    %27 = arith.subf %23, %26 : vector<2x128xf32>
    %c0_10 = arith.constant 0 : index
    %c0_11 = arith.constant 0 : index
    %c0_12 = arith.constant 0 : index
    %28 = vector.load %arg5[%c0_10, %c0_11, %c0_12] : memref<1x2x128xf32, #tpu.memory_space<vmem>>, vector<1x2x128xf32>
    %29 = vector.shape_cast %28 : vector<1x2x128xf32> to vector<2x128xf32>
    %30 = vector.shape_cast %27 : vector<2x128xf32> to vector<1x2x128xf32>
    tpu.vector_store %arg5[%c0_10, %c0_11, %c0_12], %30 {strides = array<i32>} : memref<1x2x128xf32, #tpu.memory_space<vmem>>, vector<1x2x128xf32>,
    %c0_13 = arith.constant 0 : index
    %c0_14 = arith.constant 0 : index
    %c0_15 = arith.constant 0 : index
    %31 = vector.load %arg7[%c0_13, %c0_14, %c0_15] : memref<3x4x128xf32, #tpu.memory_space<vmem>>, vector<1x4x128xf32>
    %32 = vector.shape_cast %31 : vector<1x4x128xf32> to vector<4x128xf32>
    %cst_16 = arith.constant 0.000000e+00 : f32
    %33 = vector.broadcast %cst_16 : f32 to vector<4x2x128xf32>
    %34 = arith.select %11, %21, %33 : vector<4x2x128xi1>, vector<4x2x128xf32>
    %cst_17 = arith.constant dense<0.000000e+00> : vector<4x128xf32>
    %35 = vector.multi_reduction <add>, %34, %cst_17 [1] : vector<4x2x128xf32> to vector<4x128xf32>
    %36 = arith.addf %32, %35 : vector<4x128xf32>
    %c0_18 = arith.constant 0 : index
    %c0_19 = arith.constant 0 : index
    %c0_20 = arith.constant 0 : index
    %37 = vector.load %arg7[%c0_18, %c0_19, %c0_20] : memref<3x4x128xf32, #tpu.memory_space<vmem>>, vector<1x4x128xf32>
    %38 = vector.shape_cast %37 : vector<1x4x128xf32> to vector<4x128xf32>
    %39 = vector.shape_cast %36 : vector<4x128xf32> to vector<1x4x128xf32>
    tpu.vector_store %arg7[%c0_18, %c0_19, %c0_20], %39 {strides = array<i32>} : memref<3x4x128xf32, #tpu.memory_space<vmem>>, vector<1x4x128xf32>,
    %c1 = arith.constant 1 : index
    %c0_21 = arith.constant 0 : index
    %c0_22 = arith.constant 0 : index
    %40 = vector.load %arg7[%c1, %c0_21, %c0_22] : memref<3x4x128xf32, #tpu.memory_space<vmem>>, vector<1x4x128xf32>
    %41 = vector.shape_cast %40 : vector<1x4x128xf32> to vector<4x128xf32>
    %cst_23 = arith.constant dense<0.000000e+00> : vector<4x128xf32>
    %42 = vector.multi_reduction <add>, %21, %cst_23 [1] : vector<4x2x128xf32> to vector<4x128xf32>
    %43 = arith.addf %41, %42 : vector<4x128xf32>
    %c1_24 = arith.constant 1 : index
    %c0_25 = arith.constant 0 : index
    %c0_26 = arith.constant 0 : index
    %44 = vector.load %arg7[%c1_24, %c0_25, %c0_26] : memref<3x4x128xf32, #tpu.memory_space<vmem>>, vector<1x4x128xf32>
    %45 = vector.shape_cast %44 : vector<1x4x128xf32> to vector<4x128xf32>
    %46 = vector.shape_cast %43 : vector<4x128xf32> to vector<1x4x128xf32>
    tpu.vector_store %arg7[%c1_24, %c0_25, %c0_26], %46 {strides = array<i32>} : memref<3x4x128xf32, #tpu.memory_space<vmem>>, vector<1x4x128xf32>,
    %c2 = arith.constant 2 : index
    %c0_27 = arith.constant 0 : index
    %c0_28 = arith.constant 0 : index
    %47 = vector.load %arg7[%c2, %c0_27, %c0_28] : memref<3x4x128xf32, #tpu.memory_space<vmem>>, vector<1x4x128xf32>
    %48 = vector.shape_cast %47 : vector<1x4x128xf32> to vector<4x128xf32>
    %cst_29 = arith.constant 1.000000e+00 : f32
    %cst_30 = arith.constant 0.000000e+00 : f32
    %49 = vector.broadcast %cst_29 : f32 to vector<4x2x128xf32>
    %50 = vector.broadcast %cst_30 : f32 to vector<4x2x128xf32>
    %51 = arith.select %11, %49, %50 : vector<4x2x128xi1>, vector<4x2x128xf32>
    %cst_31 = arith.constant dense<0.000000e+00> : vector<4x128xf32>
    %52 = vector.multi_reduction <add>, %51, %cst_31 [1] : vector<4x2x128xf32> to vector<4x128xf32>
    %53 = arith.addf %48, %52 : vector<4x128xf32>
    %c2_32 = arith.constant 2 : index
    %c0_33 = arith.constant 0 : index
    %c0_34 = arith.constant 0 : index
    %54 = vector.load %arg7[%c2_32, %c0_33, %c0_34] : memref<3x4x128xf32, #tpu.memory_space<vmem>>, vector<1x4x128xf32>
    %55 = vector.shape_cast %54 : vector<1x4x128xf32> to vector<4x128xf32>
    %56 = vector.shape_cast %53 : vector<4x128xf32> to vector<1x4x128xf32>
    tpu.vector_store %arg7[%c2_32, %c0_33, %c0_34], %56 {strides = array<i32>} : memref<3x4x128xf32, #tpu.memory_space<vmem>>, vector<1x4x128xf32>,
    %c0_i32_35 = arith.constant 0 : i32
    %57 = arith.cmpi eq, %arg2, %c0_i32_35 : i32
    %58 = arith.extui %57 : i1 to i32
    %c0_i32_36 = arith.constant 0 : i32
    %59 = arith.cmpi ne, %58, %c0_i32_36 : i32
    scf.if %59 {
      %c0_37 = arith.constant 0 : index
      %c0_38 = arith.constant 0 : index
      %c0_39 = arith.constant 0 : index
      %60 = vector.load %arg7[%c0_37, %c0_38, %c0_39] : memref<3x4x128xf32, #tpu.memory_space<vmem>>, vector<3x4x128xf32>
      %cst_40 = arith.constant dense<0.000000e+00> : vector<3x4xf32>
      %61 = vector.multi_reduction <add>, %60, %cst_40 [2] : vector<3x4x128xf32> to vector<3x4xf32>
      %c0_41 = arith.constant 0 : index
      %c0_42 = arith.constant 0 : index
      %c0_43 = arith.constant 0 : index
      %c0_44 = arith.constant 0 : index
      %62 = vector.load %arg6[%c0_41, %c0_42, %c0_43, %c0_44] : memref<1x1x3x4xf32, #tpu.memory_space<vmem>>, vector<1x1x3x4xf32>
      %63 = vector.shape_cast %62 : vector<1x1x3x4xf32> to vector<3x4xf32>
      %64 = vector.shape_cast %61 : vector<3x4xf32> to vector<1x1x3x4xf32>
      tpu.vector_store %arg6[%c0_41, %c0_42, %c0_43, %c0_44], %64 {strides = array<i32>} : memref<1x1x3x4xf32, #tpu.memory_space<vmem>>, vector<1x1x3x4xf32>,
    } else {
    }
    return
  }
  func.func @transform_0(%arg0: i32, %arg1: i32, %arg2: i32) -> (i32, i32, i32, i32) {
    %c1_i32 = arith.constant 1 : i32
    %0 = arith.muli %arg1, %c1_i32 : i32
    %1 = arith.addi %0, %arg2 : i32
    %c0_i32 = arith.constant 0 : i32
    %c0_i32_0 = arith.constant 0 : i32
    %c0_i32_1 = arith.constant 0 : i32
    return %arg0, %c0_i32, %1, %c0_i32_0 : i32, i32, i32, i32
  }
  func.func @transform_1(%arg0: i32, %arg1: i32, %arg2: i32) -> (i32, i32, i32) {
    %c1_i32 = arith.constant 1 : i32
    %0 = arith.muli %arg1, %c1_i32 : i32
    %1 = arith.addi %0, %arg2 : i32
    %c0_i32 = arith.constant 0 : i32
    %c0_i32_0 = arith.constant 0 : i32
    return %arg0, %1, %c0_i32 : i32, i32, i32
  }
  func.func @transform_2(%arg0: i32, %arg1: i32, %arg2: i32) -> (i32, i32, i32) {
    %c1_i32 = arith.constant 1 : i32
    %0 = arith.muli %arg1, %c1_i32 : i32
    %1 = arith.addi %0, %arg2 : i32
    %c0_i32 = arith.constant 0 : i32
    %c0_i32_0 = arith.constant 0 : i32
    return %arg0, %1, %c0_i32 : i32, i32, i32
  }
  func.func @transform_3(%arg0: i32, %arg1: i32, %arg2: i32) -> (i32, i32, i32, i32) {
    %c0_i32 = arith.constant 0 : i32
    %c0_i32_0 = arith.constant 0 : i32
    %c0_i32_1 = arith.constant 0 : i32
    return %arg0, %arg1, %c0_i32, %c0_i32_0 : i32, i32, i32, i32
  }
}

</mosaic_0001>

<bundles_post_ra>
// kernel: tpu_custom_call.1
= control target key start
LH: loop header
LB: loop body
LE: loop exit
PB: predicated region body
PF: predicated region fallthrough
CT: control target
= control target key end

     0   :  { %9 = vsyncpa [#allocation4], 0  ;;  %s1198_s0 = inlined_call_operand.hbm [shape: f32[2,4,2,128], index: 0, kind: input, shape index: {}]   ;;  %s1199_s1 = inlined_call_operand.hbm [shape: s32[2,2,128], index: 1, kind: input, shape index: {}]   ;;  %s1200_s2 = inlined_call_operand.hbm [shape: f32[2,2,128], index: 2, kind: output, shape index: {0}]   ;;  %s1201_s3 = inlined_call_operand.vmem [shape: f32[2,1,3,4], index: 3, kind: output, shape index: {1}]  }
   0x1   :  { %11 = vsyncpa [#allocation4 + $0x1], 0 }
   0x2   :  { %12 = vsyncpa [#allocation7], 0 }
   0x3   :  { %14 = vsyncpa [#allocation7 + $0x1], 0 }
   0x4   :  { %15 = vsyncpa [#allocation5], 0 }
   0x5   :  { %17 = vsyncpa [#allocation5 + $0x1], 0  ;;  %s952_s12 = smov 0   ;;  %s954_s13 = smov 0  }
   0x6   :  { %s956_s14 = smov 0   ;;  %s958_s15 = smov 0  }
   0x7   :  { %s960_s16 = smov 0   ;;  %s962_s17 = smov 0  }
   0x8 LB: > { %s680_s18 = sadd.s32 4294967295, %s927_s17   ;;  %s681_s19 = sadd.s32 4294967294, %s927_s17   ;;  %s927_s17 = sphi %s962_s17, %s23_s17   ;;  %s923_s16 = sphi %s960_s16, %s1211_s16   ;;  %s919_s15 = sphi %s958_s15, %s1210_s15   ;;  %s915_s14 = sphi %s956_s14, %s1209_s14   ;;  %s911_s13 = sphi %s954_s13, %s1208_s13   ;;  %s907_s12 = sphi %s952_s12, %s1207_s12  }
   0x9   : > { %s42_s20 = sadd.s32 1, %s923_s16  ;;  %s53_s21 = sadd.s32 1, %s915_s14 }
   0xa   : > { %p44_p0 = scmp.ge.s32.totalorder %s42_s20, 2  ;;  %p60_p1 = scmp.ne.s32.totalorder %s915_s14, %s911_s13 }
   0xb   : > { %p61_p2 = scmp.eq.s32.totalorder %s927_s17, 0  ;;  %p66_p3 = scmp.ne.s32.totalorder %s911_s13, %s907_s12 }
   0xc   : > { %s1213_s20 = smov (%p44_p0, %s42_s20), 0  ;;  %p67_p5 = scmp.eq.s32.totalorder %s680_s18, 0 }
   0xd   : > { %p993_p4 = por %p61_p2, %p60_p1  ;;  %s48_s23 = ssub.s32 %s923_s16, %s1213_s20 }
   0xe   : > { %p124_p6 = scmp.eq.s32.totalorder %s680_s18, 1  ;;  %p51_p7 = scmp.eq.s32.totalorder %s48_s23, 0 }
   0xf   : > { %p999_p8 = por %p67_p5, %p66_p3  ;;  %p130_p10 = scmp.eq.s32.totalorder %s681_s19, 1 }
  0x10   : > { %p1003_p9 = por %p124_p6, %p60_p1  ;;  %p683_p12 = scmp.ge.s32.totalorder %s927_s17, 2 }
  0x11   : > { %s1008_s26 = scalar_select %p51_p7, %s915_s14, %s53_s21  }
  0x12   : > { %p1010_p11 = por %p130_p10, %p66_p3  ;;  %p716_p13 = scmp.lt.s32.totalorder %s927_s17, 2 }
  0x13   : > { %s178_s28 = sand.u32 1, %s915_s14   ;;  %s698_s30 = sshll.u32 %s923_s16, 3 }
  0x14   : > { %s684_s29 = sshll.u32 %s178_s28, 3  ;;  %s189_s6 = scalar_lea.hbm %s1198_s0, %s698_s30 }
  0x15   : > { %s182_s7 = scalar_lea.vmem [#allocation3], %s684_s29  ;;  %s190_s9 = sshll.u32 %s189_s6, 4  ;;  %s191_s9 = int_to_ptr.hbm [resolvable:$true] %s190_s9 }
  0x16   : > { %s192_s8 = sshll.u32 %s182_s7, 4  ;;  %p1023_p0 = pnand %p716_p13, %p993_p4  ;;  %s193_s8 = int_to_ptr.vmem [resolvable:$true] %s192_s8 }
  0x17   : > { %p689_p1 = scmp.ge.s32.totalorder %s927_s17, 1  ;;  %s179_s11 = scalar_lea.sflag [#allocation4], %s178_s28 }
  0x18   : > { %s929_s18 = smov 32   ;;  %s930_s19 = smov 2  }
  0x19   : > { %708 = dma.hbm_to_vmem [thread:$0]  (!%p1023_p0), %s191_s9, 128, %s193_s8, %s179_s11, %s929_s18, %s929_s18, %s930_s19  }
  0x1a   : > { %p221_p2 = scmp.lt.s32.totalorder %s927_s17, 3  ;;  %s687_s21 = sshll.u32 %s178_s28, 1 }
  0x1b   : > { %s688_s23 = sshll.u32 %s923_s16, 1  ;;  %s206_s4 = scalar_lea.vmem [#allocation6], %s687_s21 }
  0x1c   : > { %p222_p3 = pnand %p689_p1, %p221_p2  ;;  %s212_s22 = scalar_lea.hbm %s1199_s1, %s688_s23 }
  0x1d   : > { %s216_s5 = sshll.u32 %s206_s4, 4  ;;  %s214_s6 = sshll.u32 %s212_s22, 4  ;;  %s217_s5 = int_to_ptr.vmem [resolvable:$true] %s216_s5  ;;  %s215_s6 = int_to_ptr.hbm [resolvable:$true] %s214_s6 }
  0x1e   : > { %s203_s7 = scalar_lea.sflag [#allocation7], %s178_s28  ;;  %225 = sbr.rel (%p222_p3) target bundleno = 232 (0xe8), region = 28 }
  0x1f   : > { %711 = dma.hbm_to_vmem [thread:$0]  (!%p1023_p0), %s215_s6, 32, %s217_s5, %s203_s7  }
  0x20   : > { %s1038_s8 = sand.u32 (!%p222_p3), 1, %s911_s13  }
  0x21   : > { %s690_s9 = sshll.u32 (!%p222_p3), %s1038_s8, 3  ;;  %s228_s11 = scalar_lea.sflag (!%p222_p3), [#allocation4], %s1038_s8 }
  0x22   : > { %s231_s18 = scalar_lea.vmem (!%p222_p3), [#allocation3], %s690_s9 }
  0x23   : > { %894 = dma.done.wait (%p999_p8), %s228_s11, 128  }
  0x24   : > { %896 = vsyncadd (%p999_p8), %s228_s11, 4294967168  ;;  %s691_s28 = sshll.u32 %s1038_s8, 1  ;;  %s238_s10 = scalar_lea.sflag [#allocation7], %s1038_s8 }
  0x25   : > { %s241_s19 = scalar_lea.vmem [#allocation6], %s691_s28 }
  0x26   : > { %898 = dma.done.wait (%p999_p8), %s238_s10, 32  }
  0x27   : > { %900 = vsyncadd (%p999_p8), %s238_s10, 4294967264  ;;  %v931_v0 = vmov 0.0   ;;  %vm303_vm0 = vcmask 1041408   ;;  %v1054_v1 = vld [vmem:[%s231_s18] sm:$0x3]  ;;  %vm388_vm5 = vcmask 1041409  }
  0x28   : > { %291 = vst [vmem:[#allocation2] sm:$0xf] %v931_v0  ;;  %v1056_v2 = vld [vmem:[%s231_s18 + $0x2] sm:$0x3]  ;;  %v1058_v3 = vld [vmem:[%s231_s18 + $0x4] sm:$0x3] }
  0x29   : > { %292 = vst [vmem:[#allocation2 + $0x4] sm:$0xf] %v931_v0  ;;  %v1060_v4 = vld [vmem:[%s231_s18 + $0x6] sm:$0x3]  ;;  %v304_v5 = vsel %vm303_vm0, %v1054_v1, -inf  ;;  %v305_v6 = vsel %vm303_vm0, %v1056_v2, -inf }
  0x2a   : > { %293 = vst [vmem:[#allocation2 + $0x8] sm:$0xf] %v931_v0  ;;  %v306_v7 = vsel %vm303_vm0, %v1058_v3, -inf  ;;  %v307_v8 = vsel %vm303_vm0, %v1060_v4, -inf  ;;  %v308_v9 = vmax.f32 %v304_v5, %v305_v6  ;;  %v1080_v16 = vld [vmem:[%s241_s19] sm:$0x3] }
  0x2b   : > { %v309_v10 = vmax.f32 %v306_v7, %v307_v8  ;;  %vm299_vm1 = vcmp.eq.s32.totalorder %v1080_v16, 0  ;;  %vm300_vm2 = vcmp.eq.s32.totalorder %v1080_v16, 1  ;;  %vm301_vm3 = vcmp.eq.s32.totalorder %v1080_v16, 2  ;;  %s695_s24 = sshll.u32 %s919_s15, 1  ;;  %s267_s30 = scalar_lea.vmem [#allocation8], %s691_s28 }
  0x2c   : > { %vm302_vm4 = vcmp.eq.s32.totalorder %v1080_v16, 3  ;;  %v439_v21 = vsel %vm299_vm1, 1.0, %v931_v0  ;;  %v440_v22 = vsel %vm300_vm2, 1.0, %v931_v0  ;;  %v441_v23 = vsel %vm301_vm3, 1.0, %v931_v0  ;;  %s530_s29 = scalar_lea.hbm %s1200_s2, %s695_s24  ;;  %s532_s22 = sshll.u32 %s267_s30, 4  ;;  %s533_s22 = int_to_ptr.vmem [resolvable:$true] %s532_s22 }
  0x2d   : > { %v1070_v11 = vmax.f32 %v308_v9, %v309_v10  ;;  %v443_v24 = vsel %vm303_vm0, %v439_v21, 0.0  ;;  %v450_v25 = vsel %vm303_vm0, %v440_v22, 0.0  ;;  %v442_v26 = vsel %vm302_vm4, 1.0, %v931_v0  ;;  %s534_s4 = sshll.u32 %s530_s29, 4  ;;  %s511_s5 = scalar_lea.sflag [#allocation5], %s1038_s8  ;;  %s535_s4 = int_to_ptr.hbm [resolvable:$true] %s534_s4 }
  0x2e   : > { %v444_v27 = vrot.slane %v443_v24, 4  ;;  %v451_v28 = vrot.slane %v450_v25, 4  ;;  %v457_v29 = vsel %vm303_vm0, %v441_v23, 0.0  ;;  %v464_v30 = vsel %vm303_vm0, %v442_v26, 0.0  ;;  %s855_s6 = sshra.s32 %s535_s4, 4  ;;  %s861_s18 = scalar_lea.hbm %s1200_s2, 4  ;;  %s856_s6 = int_to_ptr.hbm [resolvable:$true] %s855_s6 }
  0x2f   : > { %v311_v12 = vsub.f32 %v1054_v1, %v1070_v11  ;;  %v312_v13 = vsub.f32 %v1056_v2, %v1070_v11  ;;  %v313_v14 = vsub.f32 %v1058_v3, %v1070_v11  ;;  %v314_v15 = vsub.f32 %v1060_v4, %v1070_v11  ;;  %s857_s7 = scalar_lea.hbm %s856_s6, 2  ;;  %p862_p7 = scmp.lt.s32.totalorder %s856_s6, %s1200_s2 }
  0x30   : > { %v445_v31 = vadd.f32 %v444_v27, %v443_v24  ;;  %v452_v32 = vadd.f32 %v451_v28, %v450_v25  ;;  %v458_v33 = vrot.slane %v457_v29, 4  ;;  %v465_v34 = vrot.slane %v464_v30, 4  ;;  %p858_p4 = scmp.ne.s32.totalorder %s856_s6, %s857_s7  ;;  %p863_p8 = scmp.lt.s32.totalorder %s861_s18, %s857_s7 }
  0x31   : > { %v315_v17 = vmul.f32 1.442695, %v311_v12  ;;  %v317_v18 = vmul.f32 1.442695, %v312_v13  ;;  %v319_v19 = vmul.f32 1.442695, %v313_v14 }
  0x32   : > { %v321_v20 = vmul.f32 1.442695, %v314_v15  ;;  %v446_v38 = vrot.slane %v445_v31, 2  ;;  %v453_v39 = vrot.slane %v452_v32, 2  ;;  %v459_v42 = vadd.f32 %v458_v33, %v457_v29  ;;  %v438_v5 = vld [vmem:[#allocation2 + $0x8] sm:$0xf]  ;;  %p859_p5 = pnand %p858_p4, %p1003_p9  ;;  %p864_p10 = por %p863_p8, %p862_p7 }
  0x33   : > { %769 = vpow2.f32 %v315_v17  ;;  %v466_v43 = vadd.f32 %v465_v34, %v464_v30  ;;  %vm390_vm6 = vcmask 1042434   ;;  %vm392_vm7 = vcmask 1043459  }
  0x34   : > { %771 = vpow2.f32 %v317_v18  ;;  %v447_v47 = vadd.f32 %v446_v38, %v445_v31  ;;  %v454_v48 = vadd.f32 %v453_v39, %v452_v32  ;;  %v460_v50 = vrot.slane %v459_v42, 2  ;;  %p860_p6 = pneg %p859_p5 }
  0x35   : > { %773 = vpow2.f32 %v319_v19  ;;  %v467_v51 = vrot.slane %v466_v43, 2  ;;  %vm487_vm8 = vcmask 1043456  }
  0x36   : > { %775 = vpow2.f32 %v321_v20  ;;  %v448_v53 = vrot.slane %v447_v47, 1  ;;  %v455_v54 = vrot.slane %v454_v48, 1  ;;  %v461_v55 = vadd.f32 %v460_v50, %v459_v42  ;;  %p865_p13 = pnand %p864_p10, %p860_p6 }
  0x37   : > { %v468_v56 = vadd.f32 %v467_v51, %v466_v43 }
  0x38   : > { %v449_v58 = vadd.f32 %v448_v53, %v447_v47  ;;  %v456_v59 = vadd.f32 %v455_v54, %v454_v48  ;;  %v462_v60 = vrot.slane %v461_v55, 1 }
  0x39   : > { %v770_v35 = vpop.eup %769  ;;  %v469_v61 = vrot.slane %v468_v56, 1 }
  0x3a   : > { %v772_v36 = vpop.eup %771  ;;  %v323_v37 = vsel %vm303_vm0, %v770_v35, 0.0  ;;  %v475_v62 = vsel %vm388_vm5, %v456_v59, %v449_v58  ;;  %v463_v63 = vadd.f32 %v462_v60, %v461_v55 }
  0x3b   : > { %v774_v40 = vpop.eup %773  ;;  %v324_v41 = vsel %vm303_vm0, %v772_v36, 0.0  ;;  %v470_v0 = vadd.f32 %v469_v61, %v468_v56 }
  0x3c   : > { %v776_v44 = vpop.eup %775  ;;  %v325_v45 = vadd.f32 %v324_v41, %v323_v37  ;;  %v326_v46 = vsel %vm303_vm0, %v774_v40, 0.0  ;;  %v476_v6 = vsel %vm390_vm6, %v463_v63, %v475_v62 }
  0x3d   : > { %v328_v49 = vsel %vm303_vm0, %v776_v44, 0.0  ;;  %v477_v7 = vsel %vm392_vm7, %v470_v0, %v476_v6 }
  0x3e   : > { %v327_v52 = vadd.f32 %v326_v46, %v325_v45  ;;  %v479_v8 = vadd.f32 %v477_v7, %v438_v5 }
  0x40   : > { %v1102_v57 = vadd.f32 %v328_v49, %v327_v52  ;;  %480 = vst [vmem:[#allocation2 + $0x8] sm:$0xf] %v479_v8 }
  0x42   : > { %777 = vrcp.f32 %v1102_v57 }
  0x43   : > { %779 = vlog2.f32 %v1102_v57 }
  0x47   : > { %v486_v5 = vld [vmem:[#allocation2 + $0x8] sm:$0xf] }
  0x48   : > { %v778_v9 = vpop.eup %777 }
  0x49   : > { %v331_v10 = vmul.f32 %v778_v9, %v770_v35  ;;  %v332_v12 = vmul.f32 %v778_v9, %v772_v36  ;;  %v333_v13 = vmul.f32 %v778_v9, %v774_v40  ;;  %v334_v14 = vmul.f32 %v778_v9, %v776_v44  ;;  %v780_v57 = vpop.eup %779 }
  0x4b   : > { %v352_v15 = vsel %vm299_vm1, %v331_v10, 0.0  ;;  %v353_v17 = vsel %vm300_vm2, %v332_v12, 0.0  ;;  %v354_v18 = vsel %vm301_vm3, %v333_v13, 0.0  ;;  %v355_v19 = vsel %vm302_vm4, %v334_v14, 0.0 }
  0x4c   : > { %v356_v20 = vsel %vm303_vm0, %v352_v15, 0.0  ;;  %v363_v21 = vsel %vm303_vm0, %v353_v17, 0.0  ;;  %v370_v22 = vsel %vm303_vm0, %v354_v18, 0.0  ;;  %v377_v23 = vsel %vm303_vm0, %v355_v19, 0.0  ;;  %v351_v15 = vld [vmem:[#allocation2] sm:$0xf] }
  0x4d   : > { %v357_v24 = vrot.slane %v356_v20, 4  ;;  %v364_v25 = vrot.slane %v363_v21, 4  ;;  %v371_v26 = vrot.slane %v370_v22, 4  ;;  %v378_v27 = vrot.slane %v377_v23, 4 }
  0x4e   : > { %v399_v28 = vsel %vm303_vm0, %v331_v10, 0.0  ;;  %v406_v29 = vsel %vm303_vm0, %v332_v12, 0.0  ;;  %v413_v30 = vsel %vm303_vm0, %v333_v13, 0.0  ;;  %v420_v31 = vsel %vm303_vm0, %v334_v14, 0.0 }
  0x4f   : > { %v358_v32 = vadd.f32 %v357_v24, %v356_v20  ;;  %v365_v33 = vadd.f32 %v364_v25, %v363_v21  ;;  %v372_v34 = vadd.f32 %v371_v26, %v370_v22  ;;  %v379_v35 = vadd.f32 %v378_v27, %v377_v23  ;;  %v398_v26 = vld [vmem:[#allocation2 + $0x4] sm:$0xf] }
  0x50   : > { %v400_v36 = vrot.slane %v399_v28, 4  ;;  %v407_v37 = vrot.slane %v406_v29, 4  ;;  %v414_v38 = vrot.slane %v413_v30, 4  ;;  %v421_v39 = vrot.slane %v420_v31, 4 }
  0x51   : > { %v359_v40 = vrot.slane %v358_v32, 2  ;;  %v366_v41 = vrot.slane %v365_v33, 2  ;;  %v373_v42 = vrot.slane %v372_v34, 2  ;;  %v380_v43 = vrot.slane %v379_v35, 2 }
  0x52   : > { %v401_v44 = vadd.f32 %v400_v36, %v399_v28  ;;  %v408_v45 = vadd.f32 %v407_v37, %v406_v29  ;;  %v415_v46 = vadd.f32 %v414_v38, %v413_v30  ;;  %v422_v47 = vadd.f32 %v421_v39, %v420_v31 }
  0x53   : > { %v360_v48 = vadd.f32 %v359_v40, %v358_v32  ;;  %v367_v49 = vadd.f32 %v366_v41, %v365_v33  ;;  %v374_v50 = vadd.f32 %v373_v42, %v372_v34  ;;  %v381_v51 = vadd.f32 %v380_v43, %v379_v35 }
  0x54   : > { %v402_v52 = vrot.slane %v401_v44, 2  ;;  %v409_v53 = vrot.slane %v408_v45, 2  ;;  %v416_v54 = vrot.slane %v415_v46, 2  ;;  %v423_v55 = vrot.slane %v422_v47, 2 }
  0x55   : > { %v361_v56 = vrot.slane %v360_v48, 1  ;;  %v368_v58 = vrot.slane %v367_v49, 1  ;;  %v375_v59 = vrot.slane %v374_v50, 1  ;;  %v382_v60 = vrot.slane %v381_v51, 1 }
  0x56   : > { %v403_v61 = vadd.f32 %v402_v52, %v401_v44  ;;  %v410_v62 = vadd.f32 %v409_v53, %v408_v45  ;;  %v417_v63 = vadd.f32 %v416_v54, %v415_v46  ;;  %v424_v0 = vadd.f32 %v423_v55, %v422_v47 }
  0x57   : > { %v362_v6 = vadd.f32 %v361_v56, %v360_v48  ;;  %v369_v7 = vadd.f32 %v368_v58, %v367_v49  ;;  %v376_v8 = vadd.f32 %v375_v59, %v374_v50  ;;  %v383_v9 = vadd.f32 %v382_v60, %v381_v51 }
  0x58   : > { %v404_v10 = vrot.slane %v403_v61, 1  ;;  %v411_v12 = vrot.slane %v410_v62, 1  ;;  %v418_v13 = vrot.slane %v417_v63, 1  ;;  %v425_v14 = vrot.slane %v424_v0, 1 }
  0x59   : > { %v389_v17 = vsel %vm388_vm5, %v369_v7, %v362_v6  ;;  %v494_v18 = vsel %vm487_vm8, %v486_v5, 0.0  ;;  %v338_v35 = vsel %vm299_vm1, %v1054_v1, 0.0  ;;  %v339_v36 = vsel %vm300_vm2, %v1056_v2, 0.0 }
  0x5a   : > { %v391_v19 = vsel %vm390_vm6, %v376_v8, %v389_v17  ;;  %v405_v20 = vadd.f32 %v404_v10, %v403_v61  ;;  %v412_v21 = vadd.f32 %v411_v12, %v410_v62  ;;  %v419_v22 = vadd.f32 %v418_v13, %v417_v63  ;;  %495 = vadd.xlane.f32.xlu1 %v494_v18 }
  0x5b   : > { %v393_v23 = vsel %vm392_vm7, %v383_v9, %v391_v19  ;;  %v426_v24 = vadd.f32 %v425_v14, %v424_v0  ;;  %v342_v37 = vsel %vm303_vm0, %v338_v35, 0.0  ;;  %v343_v38 = vsel %vm303_vm0, %v339_v36, 0.0 }
  0x5c   : > { %v395_v25 = vadd.f32 %v393_v23, %v351_v15  ;;  %v431_v27 = vsel %vm388_vm5, %v412_v21, %v405_v20  ;;  %v340_v39 = vsel %vm301_vm3, %v1058_v3, 0.0  ;;  %v344_v40 = vadd.f32 %v343_v38, %v342_v37 }
  0x5d   : > { %v432_v28 = vsel %vm390_vm6, %v419_v22, %v431_v27  ;;  %v345_v1 = vsel %vm303_vm0, %v340_v39, 0.0  ;;  %v336_v41 = vmul.f32 0.6931472, %v780_v57  ;;  %v341_v2 = vsel %vm302_vm4, %v1060_v4, 0.0 }
  0x5e   : > { %396 = vst [vmem:[#allocation2] sm:$0xf] %v395_v25  ;;  %v433_v29 = vsel %vm392_vm7, %v426_v24, %v432_v28  ;;  %v346_v42 = vadd.f32 %v345_v1, %v344_v40  ;;  %v347_v43 = vsel %vm303_vm0, %v341_v2, 0.0 }
  0x5f   : > { %v435_v30 = vadd.f32 %v433_v29, %v398_v26  ;;  %v337_v3 = vadd.f32 %v336_v41, %v1070_v11 }
  0x60   : > { %v348_v44 = vadd.f32 %v347_v43, %v346_v42 }
  0x61   : > { %436 = vst [vmem:[#allocation2 + $0x4] sm:$0xf] %v435_v30 }
  0x62   : > { %v349_v45 = vsub.f32 %v337_v3, %v348_v44 }
  0x64   : > { %350 = vst [vmem:[%s267_s30] sm:$0x3] %v349_v45 }
  0x65   : > { %v484_v31 = vld [vmem:[#allocation2] sm:$0xf] }
  0x66   : > { %v488_v32 = vsel %vm487_vm8, %v484_v31, 0.0 }
  0x67   : > { %489 = vadd.xlane.f32.xlu0 %v488_v32 }
  0x68   : > { %v485_v33 = vld [vmem:[#allocation2 + $0x4] sm:$0xf] }
  0x69   : > { %v491_v34 = vsel %vm487_vm8, %v485_v33, 0.0 }
  0x6f   : > { %492 = vadd.xlane.f32.xlu0 %v491_v34 }
  0x70   : > { %868 = shalt.err (!%p865_p13)
}
  0x71   : > { %703 = dma.vmem_to_hbm [thread:$0]  (%p1003_p9), %s533_s22, 32, %s535_s4, %s511_s5   ;;  %v500_v11 = vlaneseq  ;;  %vm508_vm9 = vcmask 26624  }
  0x72   : > { %p280_p0 = scmp.lt.s32.totalorder %s919_s15, 1 }
  0x73   : > { %v501_v16 = vand.u32 127, %v500_v11 }
  0x74   : > { %s1215_s15 = smov (!%p280_p0, %s919_s15), 1 }
  0x75   : > { %s693_s8 = sshll.u32 %s1215_s15, 2 }
  0x76   : > { %s286_s21 = scalar_lea.vmem %s1201_s3, %s693_s8 }
  0xcd   : > { %v496_v46 = vpop.xlane.xlu1 %495 }
  0xce   : > { %v504_v48 = vperm.slane %v496_v46, %v501_v16 }
  0xda   : > { %v490_v4 = vpop.xlane.xlu0 %489 }
  0xdb   : > { %v502_v49 = vperm.slane %v490_v4, %v501_v16 }
  0xe2   : > { %v493_v47 = vpop.xlane.xlu0 %492 }
  0xe3   : > { %v503_v50 = vperm.slane %v493_v47, %v501_v16 }
  0xe5   : > { %v505_v51 = vsel %vm388_vm5, %v503_v50, %v502_v49 }
  0xe6   : > { %v506_v52 = vsel %vm390_vm6, %v504_v48, %v505_v51 }
  0xe7   : > { %509 = vst.msk [vmem:[%s286_s21] sm:$0x7] %vm508_vm9, %v506_v52 }
  0xe8 PF: > { %s549_s25 = sand.u32 1, %s907_s12   ;;  %p713_p9 = pnand %p683_p12, %p1010_p11 }
  0xe9   : > { %s550_s15 = scalar_lea.sflag [#allocation5], %s549_s25 }
  0xea   : > { %p714_p1 = pneg %p713_p9 }
  0xec   : > { %902 = dma.done.wait (%p714_p1), %s550_s15, 32  }
  0xed   : > { %904 = vsyncadd (%p714_p1), %s550_s15, 4294967264  ;;  %s23_s17 = sadd.s32 1, %s927_s17   ;;  %s1207_s12 = smov %s911_s13 }
  0xee   : > { %p20_p2 = scmp.ge.s32.totalorder %s23_s17, 4   ;;  %s1208_s13 = smov %s915_s14 }
  0xef   : > { %s1209_s14 = smov %s1008_s26  ;;  %s1210_s15 = smov %s923_s16 }
  0xf0   : > { %s1211_s16 = smov %s1213_s20  ;;  %22 = sbr.rel (!%p20_p2) target bundleno = 8 (0x8), region = 108 }
  0xf5   :  { %566 = vsyncpa [#allocation4], 1 }
  0xf6   :  { %568 = vsyncpa [#allocation4 + $0x1], 1 }
  0xf7   :  { %569 = vsyncpa [#allocation7], 1 }
  0xf8   :  { %571 = vsyncpa [#allocation7 + $0x1], 1 }
  0xf9   :  { %572 = vsyncpa [#allocation5], 1 }
  0xfa   :  { %574 = vsyncpa [#allocation5 + $0x1], 1 }

</bundles_post_ra>
